<compile_context>
chip_gen: v6e
topology: v6e:2x2x1
jax: 0.10.0
libtpu: 0.0.40
codegen_flags: <defaults>
</compile_context>

<pallas_src>
from functools import partial

import numpy as np
import jax
import jax.numpy as jnp
from jax.experimental import pallas as pl
from jax.experimental.pallas import tpu as pltpu


# ---------------------------------------------------------------------------
# Host-side parameter construction (matches the PyTorch __init__, in float64)
# ---------------------------------------------------------------------------
def legt_transition(N):
    Q = np.arange(N, dtype=np.float64)
    R = (2 * Q + 1) ** 0.5
    j, i = np.meshgrid(Q, Q)            # i = row index, j = col index
    A = R[:, None] * np.where(i < j, (-1.0) ** (i - j), 1.0) * R[None, :]
    B = R[:, None]
    return -A, B


def bilinear_discretize(A, B, dt):
    """scipy.signal.cont2discrete(..., method='bilinear') for (A, B)."""
    n = A.shape[0]
    I = np.eye(n)
    ima = I - (dt / 2.0) * A
    dA = np.linalg.solve(ima, I + (dt / 2.0) * A)
    dB = np.linalg.solve(ima, dt * B)
    return dA, dB.reshape(n)


def make_hippo_params(N, input_dim, L, dt=1.0, c=0.0):
    """Returns (base_N, dA_f32, dB_f32, M_f32).

    M has shape (L, base_N) with M[t] = dB @ dA.T^(L-1-t), so that
      c_L[d, b, :] = sum_t base_input[b, t, d] * M[t, :]
    for every input dimension d (the weight is shared across dims -- this is
    the block-diagonal structure the kernel exploits).
    Built entirely in float64 (legT dA powers do not decay), cast to f32 once.
    dA/dB are returned for the sequential reference implementation.
    """
    base_N = N // input_dim
    A, B = legt_transition(base_N)
    A = A + np.eye(base_N) * c
    dA, dB = bilinear_discretize(A, B.reshape(base_N, 1), dt)      # float64

    M = np.zeros((L, base_N), dtype=np.float64)
    v = dB.copy()
    for t in range(L - 1, -1, -1):
        M[t] = v
        v = v @ dA.T

    return (base_N,
            jnp.asarray(dA, jnp.float32),
            jnp.asarray(dB, jnp.float32),
            jnp.asarray(M, jnp.float32))


# ---------------------------------------------------------------------------
# Pallas kernel: tiled GEMM  out = U @ M  with direct f32 accumulation
# ---------------------------------------------------------------------------
def hippo_gemm_kernel(u_ref, m_ref, out_ref, *, kt, m_resident):
    # u_ref:   (rt, kt)          activation rows (one (batch, dim) pair per row)
    # m_ref:   (K, base_N) if m_resident (VMEM-resident, fetched once)
    #          (kt, base_N) otherwise (streamed per k step)
    # out_ref: (rt, base_N) f32  resident across the k axis (block index (i, 0))
    k = pl.program_id(1)

    @pl.when(k == 0)
    def _():
        out_ref[...] = jnp.zeros_like(out_ref)

    if m_resident:
        off = pl.multiple_of(k * kt, kt)
        m = m_ref[pl.ds(off, kt), :]
    else:
        m = m_ref[...]

    out_ref[...] += jnp.dot(u_ref[...], m, preferred_element_type=jnp.float32)


def hippo_gemm(u, M, *, row_tile_max=256, k_tile_max=2048,
               m_resident_budget_bytes=2 << 20):
    """u: (rows, K) f32, M: (K, base_N) f32  ->  (rows, base_N) f32."""
    rows, K = u.shape
    Km, base_N = M.shape
    assert K == Km

    # ---- contraction (time) tiling: prefer a kt that divides K exactly ----
    if K <= k_tile_max:
        kt = K                                     # full extent, no padding
    else:
        kt_cap = max(128, (k_tile_max // 128) * 128)   # kt must be 128-aligned
        kt = 0
        for cand in range(kt_cap, 127, -128):
            if K % cand == 0:
                kt = cand
                break
        if kt == 0:
            # Rare fallback: K > k_tile_max with no 128-multiple divisor.
            # Zero-pad once (correctness preserved; costs one extra HBM pass).
            kt = kt_cap
            pad = (-K) % kt
            u = jnp.pad(u, ((0, 0), (0, pad)))
            M = jnp.pad(M, ((0, pad), (0, 0)))
            K = K + pad
    grid_k = K // kt

    # ---- row tiling: rows = batch*input_dim ----
    # When rows >= 16, ensure >= 2 iterations on the "parallel" axis so both
    # v7x TensorCores (and their HBM paths) get work.
    row_tile_max = max(8, (row_tile_max // 8) * 8)
    if rows <= row_tile_max:
        if rows >= 16:
            rt = min(row_tile_max, ((rows + 1) // 2 + 7) // 8 * 8)
        else:
            rt = rows                              # full extent (tiny problems)
    else:
        rt = row_tile_max
    grid_i = pl.cdiv(rows, rt)

    # ---- keep small M VMEM-resident (fetched from HBM exactly once) ----
    m_bytes = K * base_N * M.dtype.itemsize
    m_resident = (grid_k == 1) or (m_bytes <= m_resident_budget_bytes)
    if m_resident:
        m_spec = pl.BlockSpec((K, base_N), lambda i, k: (0, 0))
    else:
        m_spec = pl.BlockSpec((kt, base_N), lambda i, k: (k, 0))

    kernel = partial(hippo_gemm_kernel, kt=kt, m_resident=m_resident)

    itemsize = int(u.dtype.itemsize)
    cost = pl.CostEstimate(
        flops=2 * rows * K * base_N,
        transcendentals=0,
        bytes_accessed=(rows * K + K * base_N + rows * base_N) * itemsize,
    )

    out = pl.pallas_call(
        kernel,
        out_shape=jax.ShapeDtypeStruct((rows, base_N), jnp.float32),
        grid_spec=pltpu.PrefetchScalarGridSpec(
            num_scalar_prefetch=0,
            grid=(grid_i, grid_k),                 # k innermost: required by
            in_specs=[                             # the k==0 init in the kernel
                pl.BlockSpec((rt, kt), lambda i, k: (i, k)),
                m_spec,
            ],
            out_specs=pl.BlockSpec((rt, base_N), lambda i, k: (i, 0)),
        ),
        compiler_params=pltpu.CompilerParams(
            dimension_semantics=("parallel", "arbitrary")),
        cost_estimate=cost,
    )(u, M)
    return out


# ---------------------------------------------------------------------------
# Forward wrapper reproducing MultiDimHiPPO.forward (slice_input=None path)
# ---------------------------------------------------------------------------
def multidim_hippo_forward(base_input, M, input_dim, base_N, *, use_pallas=True):
    """
    base_input: (batch, L, input_dim) float32
    returns:    (1, batch, input_dim * base_N) float32
    NOTE: the PyTorch reference's bmm(f, dB_expand) only type-checks for
    batch_size == 1; we implement the intended outer-product semantics
    (f_t * dB per (dim, batch)), identical in that case.
    """
    # TODO(synk): slice_input branch, fast=True variable_unroll path, and
    # reconstruct()/basis() (scipy Legendre evaluation) are outside the default
    # forward pass and are not implemented here.
    batch, L, _ = base_input.shape
    # (B, L, I) -> (B, I, L) -> (B*I, L): single wrapper-side layout transpose.
    u = jnp.transpose(base_input, (0, 2, 1)).reshape(batch * input_dim, L)
    u = u.astype(jnp.float32)
    if use_pallas:
        out = hippo_gemm(u, M)                     # (B*I, base_N)
    else:
        # Tiny-problem fallback: pallas_call launch overhead dwarfs the GEMM.
        out = jnp.dot(u, M, preferred_element_type=jnp.float32)
    # Row r = b*input_dim + d  ->  out[0, b, d*base_N + n], matching the
    # original c.permute(1, 0, 2).reshape(1, B, -1) layout.
    return out.reshape(1, batch, input_dim * base_N)


def multidim_hippo_forward_ref(base_input, dA, dB, input_dim, base_N):
    """Pure-JAX sequential recurrence (ground truth for the GEMM reformulation)."""
    batch, L, _ = base_input.shape
    u = jnp.transpose(base_input, (2, 0, 1))                  # (I, B, L)
    c = jnp.zeros((input_dim, batch, base_N), jnp.float32)
    dA_T = dA.T
    for t in range(L):
        f = u[:, :, t][..., None]                             # (I, B, 1)
        c = jnp.einsum('ibn,nm->ibm', c, dA_T) + f * dB[None, None, :]
    return jnp.transpose(c, (1, 0, 2)).reshape(1, batch, input_dim * base_N)


if __name__ == "__main__":
    # Small shapes consistent with the module: N=128, input_dim=4 -> base_N=32
    N = 128
    input_dim = 4
    batch = 2
    L = 8

    base_N, dA, dB, M = make_hippo_params(N, input_dim, L, dt=1.0, c=0.0)

    key = jax.random.PRNGKey(0)
    base_input = jax.random.normal(key, (batch, L, input_dim), dtype=jnp.float32)

    out = multidim_hippo_forward(base_input, M, input_dim, base_N)
    out = jax.block_until_ready(out)
    assert out.shape == (1, batch, input_dim * base_N)

    ref = multidim_hippo_forward_ref(base_input, dA, dB, input_dim, base_N)
    # The GEMM reformulation changes f32 accumulation order vs. the sequential
    # recurrence (M precomputed in f64); tolerance sized accordingly.
    np.testing.assert_allclose(np.asarray(out), np.asarray(ref),
                               rtol=2e-3, atol=2e-3)

    # Second config: exercise the multi-tile accumulation paths (grid 2x2),
    # both with VMEM-resident M (sliced per k step) and with streamed M blocks.
    batch2, L2 = 4, 256
    base_N2, dA2, dB2, M2 = make_hippo_params(N, input_dim, L2, dt=1.0, c=0.0)
    base_input2 = jax.random.normal(jax.random.PRNGKey(1),
                                    (batch2, L2, input_dim), dtype=jnp.float32)
    u2 = jnp.transpose(base_input2, (0, 2, 1)).reshape(batch2 * input_dim, L2)
    ref2 = np.asarray(u2) @ np.asarray(M2)

    out2a = hippo_gemm(u2, M2, row_tile_max=8, k_tile_max=128)   # resident M
    out2b = hippo_gemm(u2, M2, row_tile_max=8, k_tile_max=128,
                       m_resident_budget_bytes=0)                # streamed M
    jax.block_until_ready((out2a, out2b))
    np.testing.assert_allclose(np.asarray(out2a), ref2, rtol=1e-3, atol=1e-2)
    np.testing.assert_allclose(np.asarray(out2b), ref2, rtol=1e-3, atol=1e-2)

    print("KERNEL_OK")
</pallas_src>

<mosaic_0001>
module attributes {stable_mosaic.version = 11 : i64} {
  func.func @hippo_gemm_kernel(%arg0: i32, %arg1: i32, %arg2: memref<8x8xf32, #tpu.memory_space<vmem>>, %arg3: memref<8x32xf32, #tpu.memory_space<vmem>>, %arg4: memref<8x32xf32, #tpu.memory_space<vmem>>) attributes {dimension_semantics = [#tpu.dimension_semantics<parallel>, #tpu.dimension_semantics<arbitrary>], iteration_bounds = array<i64: 1, 1>, scalar_prefetch = 0 : i64, scratch_operands = 0 : i64, tpu.core_type = #tpu.core_type<tc>, window_params = [{transform_indices = @transform_0, window_bounds = array<i64: 8, 8>}, {pipeline_mode = #tpu.pipeline_mode<synchronous>, transform_indices = @transform_1, window_bounds = array<i64: 8, 32>}, {transform_indices = @transform_2, window_bounds = array<i64: 8, 32>}]} {
    %c0_i32 = arith.constant 0 : i32
    %0 = arith.cmpi eq, %arg1, %c0_i32 : i32
    %1 = arith.extui %0 : i1 to i32
    %c0_i32_0 = arith.constant 0 : i32
    %2 = arith.cmpi ne, %1, %c0_i32_0 : i32
    scf.if %2 {
      %cst_7 = arith.constant 0.000000e+00 : f32
      %12 = vector.broadcast %cst_7 : f32 to vector<8x32xf32>
      %c0_8 = arith.constant 0 : index
      %c0_9 = arith.constant 0 : index
      %13 = vector.load %arg4[%c0_8, %c0_9] : memref<8x32xf32, #tpu.memory_space<vmem>>, vector<8x32xf32>
      tpu.vector_store %arg4[%c0_8, %c0_9], %12 {strides = array<i32>} : memref<8x32xf32, #tpu.memory_space<vmem>>, vector<8x32xf32>,
    } else {
    }
    %c8_i32 = arith.constant 8 : i32
    %3 = arith.muli %arg1, %c8_i32 : i32
    %4 = tpu.assume_multiple %3, 8 : i32
    %5 = arith.index_cast %4 : i32 to index
    %c0 = arith.constant 0 : index
    %6 = vector.load %arg3[%5, %c0] : memref<8x32xf32, #tpu.memory_space<vmem>>, vector<8x32xf32>
    %c0_1 = arith.constant 0 : index
    %c0_2 = arith.constant 0 : index
    %7 = vector.load %arg4[%c0_1, %c0_2] : memref<8x32xf32, #tpu.memory_space<vmem>>, vector<8x32xf32>
    %c0_3 = arith.constant 0 : index
    %c0_4 = arith.constant 0 : index
    %8 = vector.load %arg2[%c0_3, %c0_4] : memref<8x8xf32, #tpu.memory_space<vmem>>, vector<8x8xf32>
    %cst = arith.constant dense<0.000000e+00> : vector<8x32xf32>
    %9 = tpu.matmul %8, %6, %cst {dimension_numbers = #tpu.dot_dimension_numbers<[1], [0], [0], [1], [0, 0, 1, 1], [], []>} : vector<8x8xf32>, vector<8x32xf32>, vector<8x32xf32> -> vector<8x32xf32>
    %10 = arith.addf %7, %9 : vector<8x32xf32>
    %c0_5 = arith.constant 0 : index
    %c0_6 = arith.constant 0 : index
    %11 = vector.load %arg4[%c0_5, %c0_6] : memref<8x32xf32, #tpu.memory_space<vmem>>, vector<8x32xf32>
    tpu.vector_store %arg4[%c0_5, %c0_6], %10 {strides = array<i32>} : memref<8x32xf32, #tpu.memory_space<vmem>>, vector<8x32xf32>,
    return
  }
  func.func @transform_0(%arg0: i32, %arg1: i32) -> (i32, i32) {
    %c0_i32 = arith.constant 0 : i32
    return %arg0, %arg1 : i32, i32
  }
  func.func @transform_1(%arg0: i32, %arg1: i32) -> (i32, i32) {
    %c0_i32 = arith.constant 0 : i32
    %c0_i32_0 = arith.constant 0 : i32
    %c0_i32_1 = arith.constant 0 : i32
    return %c0_i32, %c0_i32_0 : i32, i32
  }
  func.func @transform_2(%arg0: i32, %arg1: i32) -> (i32, i32) {
    %c0_i32 = arith.constant 0 : i32
    %c0_i32_0 = arith.constant 0 : i32
    return %arg0, %c0_i32 : i32, i32
  }
}

</mosaic_0001>

<bundles_post_ra>
// kernel: tpu_custom_call.1
= control target key start
LH: loop header
LB: loop body
LE: loop exit
PB: predicated region body
PF: predicated region fallthrough
CT: control target
= control target key end

     0   :  { %7 = vsyncpa [#allocation3], 0  ;;  %s250_s0 = inlined_call_operand.hbm [shape: f32[8,8], index: 0, kind: input, shape index: {}]   ;;  %s251_s1 = inlined_call_operand.hbm [shape: f32[8,32], index: 1, kind: input, shape index: {}]   ;;  %s252_s2 = inlined_call_operand.hbm [shape: f32[8,32], index: 2, kind: output, shape index: {}]  }
   0x1   :  { %8 = vsyncpa [#allocation6], 0 }
   0x2   :  { %9 = vsyncpa [#allocation4], 0  ;;  %s219_s9 = smov [#allocation2]   ;;  %s220_s11 = smov [#allocation5]  }
   0x3   :  { %s16_s10 = sshll.u32 %s219_s9, 4  ;;  %s26_s12 = sshll.u32 %s220_s11, 4  ;;  %s17_s10 = int_to_ptr.vmem [resolvable:$true] %s16_s10  ;;  %s27_s12 = int_to_ptr.vmem [resolvable:$true] %s26_s12 }
   0x4   :  { %s161_s13 = scalar_lea.vmem %s17_s10, 128  ;;  %p166_p1 = scmp.lt.s32.totalorder %s17_s10, %s17_s10 }
   0x5   :  { %p162_p0 = scmp.ne.s32.totalorder %s17_s10, %s161_s13  ;;  %p167_p2 = scmp.lt.s32.totalorder %s161_s13, %s161_s13 }
   0x7   :  { %p168_p3 = por %p167_p2, %p166_p1 }
   0x9   :  { %p169_p4 = pnand %p168_p3, %p162_p0 }
   0xb   :  { %172 = shalt.err (!%p169_p4)
}
   0xc   :  { %19 = dma.hbm_to_vmem [thread:$0]  %s250_s0, 128, %s17_s10, [#allocation3]  }
   0xd   :  { %s181_s16 = scalar_lea.vmem %s27_s12, 128  ;;  %p186_p6 = scmp.lt.s32.totalorder %s27_s12, %s27_s12 }
   0xe   :  { %p182_p5 = scmp.ne.s32.totalorder %s27_s12, %s181_s16  ;;  %p187_p7 = scmp.lt.s32.totalorder %s181_s16, %s181_s16 }
  0x10   :  { %p188_p8 = por %p187_p7, %p186_p6 }
  0x12   :  { %p189_p9 = pnand %p188_p8, %p182_p5 }
  0x14   :  { %192 = shalt.err (!%p189_p9)
}
  0x15   :  { %29 = dma.hbm_to_vmem [thread:$0]  %s251_s1, 128, %s27_s12, [#allocation6]  }
  0x16   :  { %213 = dma.done.wait [#allocation3], 128  }
  0x17   :  { %214 = vsyncadd [#allocation3], 4294967168 }
  0x18   :  { %215 = dma.done.wait [#allocation6], 128  }
  0x19   :  { %216 = vsyncadd [#allocation6], 4294967168  ;;  %vm40_vm0 = vcmask 261120   ;;  %v221_v0 = vmov 0.0   ;;  %vm222_vm1 = vmmov 0   ;;  %vm47_vm2 = vcmask 64512  }
  0x1a   :  { %41 = vst.msk [vmem:[#allocation7] sm:$0xff] %vm40_vm0, %v221_v0  ;;  %143 = vmatprep.subr.mxu0 %v221_v0  ;;  %145 = vmatprep.mubr.msk.f32.mxu0 %vm222_vm1, %v221_v0  ;;  %v44_v1 = vld [vmem:[#allocation5] sm:$0xff]  ;;  %v46_v2 = vld [vmem:[#allocation2] sm:$0xff]  ;;  %s223_s0 = smov [#allocation7]  }
  0x1b   :  { %144 = vmatpush3.msra.mxu0 %v44_v1  ;;  %s130_s19 = sshll.u32 %s223_s0, 4  ;;  %s131_s19 = int_to_ptr.vmem [resolvable:$true] %s130_s19 }
  0x1c   :  { %146 = vmatmul.mubr.msk.f32.vlgmr.msra.gmra.mxu0 %vm47_vm2, %v46_v2  ;;  %s193_s1 = scalar_lea.vmem %s131_s19, 128  ;;  %p198_p11 = scmp.lt.s32.totalorder %s131_s19, %s131_s19 }
  0x1d   :  { %p194_p10 = scmp.ne.s32.totalorder %s131_s19, %s193_s1  ;;  %p199_p12 = scmp.lt.s32.totalorder %s193_s1, %s193_s1 }
  0x1f   :  { %p200_p13 = por %p199_p12, %p198_p11 }
  0x21   :  { %v45_v3 = vld [vmem:[#allocation7] sm:$0xff]  ;;  %p201_p0 = pnand %p200_p13, %p194_p10 }
  0xdc   :  { %v117_v4 = vpop.f32.mrf.mxu0 }
  0xdd   :  { %v121_v5 = vadd.f32 %v117_v4, %v45_v3 }
  0xde   :  { %v147_v6 = vpop.f32.mrf.mxu0 }
  0xdf   :  { %123 = vst.msk [vmem:[#allocation7] sm:$0xff] %vm40_vm0, %v121_v5 }
  0xe0   :  { %204 = shalt.err (!%p201_p0)
}
  0xe1   :  { %133 = dma.vmem_to_hbm [thread:$0]  %s131_s19, 128, %s252_s2, [#allocation4]  }
  0xe2   :  { %217 = dma.done.wait [#allocation4], 128  }
  0xe3   :  { %218 = vsyncadd [#allocation4], 4294967168 }
  0xe4   :  { %137 = vsyncpa [#allocation3], 1 }
  0xe5   :  { %138 = vsyncpa [#allocation6], 1 }
  0xe6   :  { %139 = vsyncpa [#allocation4], 1 }

</bundles_post_ra>
